<compile_context>
chip_gen: v7x
topology: tpu7x:2x2x1
jax: 0.10.0
libtpu: 0.0.40
codegen_flags: <defaults>
</compile_context>

<pallas_src>
from functools import partial

import numpy as np
import jax
import jax.numpy as jnp
from jax import lax
from jax.experimental import pallas as pl
from jax.experimental.pallas import tpu as pltpu


# ----------------------------- fused Pallas kernel ----------------------------

def fused_kernel(tok_ref, emb_hbm, wcat_ref, cb_ref, fcw_ref, fcb_ref,
                 o_ref, emb_vmem, sem):
    # tok_ref : (B_pad, S) int32  SMEM (scalar prefetch)
    # emb_hbm : (V, H)     f32    HBM  (memory_space=pl.ANY)
    # wcat_ref: (H, NP)    f32    conv taps: lanes 0..2 = conv1, lanes 3..6 = conv2
    # cb_ref  : (1, 2)     f32    conv biases [b1, b2]
    # fcw_ref : (2, NP)    f32    fc weight^T, zero-padded to NP lanes
    # fcb_ref : (1, NP)    f32    fc bias, zero-padded
    # o_ref   : (BT, NP)   f32    padded logits for this batch block
    # emb_vmem: (BT*S, H)  f32    gathered embeddings (scratch)
    # sem     :                   DMA semaphore
    BT = o_ref.shape[0]
    S = tok_ref.shape[1]
    T1, T2 = S - 2, S - 3
    blk = pl.program_id(0)

    # ---- fused embedding gather: one small row DMA per token -----------------
    @pl.loop(0, BT)
    def _(b):
        @pl.loop(0, S)
        def _(s):
            tok = tok_ref[blk * BT + b, s]
            pltpu.make_async_copy(emb_hbm.at[tok],
                                  emb_vmem.at[b * S + s], sem).start()

    @pl.loop(0, BT * S)
    def _(i):
        # All copies have identical (H,) shape, so a same-shaped dummy
        # descriptor waits for exactly one of them; loop waits for all.
        pltpu.make_async_copy(emb_hbm.at[0], emb_vmem.at[0], sem).wait()

    # ---- both 1-channel convs as ONE lane-dense MXU matmul -------------------
    # P[r, j] = emb_row_r . tap_j   (taps zero-padded out to NP lanes)
    P = jnp.dot(emb_vmem[...], wcat_ref[...],
                preferred_element_type=jnp.float32,
                precision=lax.Precision.HIGHEST)              # (BT*S, NP)
    P3 = P.reshape(BT, S, -1)                                 # (BT, S, NP)

    # conv k=3: c1[b,t] = P[b,t,0] + P[b,t+1,1] + P[b,t+2,2]
    c1 = P3[:, 0:T1, 0:1] + P3[:, 1:T1 + 1, 1:2] + P3[:, 2:T1 + 2, 2:3]
    # conv k=4: c2[b,t] = P[b,t,3] + P[b,t+1,4] + P[b,t+2,5] + P[b,t+3,6]
    c2 = (P3[:, 0:T2, 3:4] + P3[:, 1:T2 + 1, 4:5]
          + P3[:, 2:T2 + 2, 5:6] + P3[:, 3:T2 + 3, 6:7])

    # max over time; conv bias + ReLU commute with max (monotone) -> exact.
    m = jnp.concatenate([jnp.max(c1, axis=1), jnp.max(c2, axis=1)], axis=1)  # (BT,2)
    feat = jnp.maximum(m + cb_ref[...], 0.0)                                 # (BT,2)

    # ---- FC(2 -> C) as two VPU broadcast multiply-adds (skip the MXU) --------
    o_ref[...] = (feat[:, 0:1] * fcw_ref[0:1, :]
                  + feat[:, 1:2] * fcw_ref[1:2, :]
                  + fcb_ref[...])


# -------------------------- parameter preprocessing ---------------------------

def preprocess_params(params, num_classes, lane=128):
    """One-time layout prep (hoisted out of the forward pass)."""
    w1, b1 = params["conv1"]            # (1,1,3,H), (1,)
    w2, b2 = params["conv2"]            # (1,1,4,H), (1,)
    fc_w, fc_b = params["fc"]           # (num_classes, 2), (num_classes,)
    H = params["emb"].shape[1]
    NP = ((num_classes + lane - 1) // lane) * lane
    # Wcat: column j holds tap j's H weights (cols 0..2 conv1, 3..6 conv2).
    wcat = jnp.zeros((H, NP), jnp.float32)
    wcat = wcat.at[:, 0:3].set(w1.reshape(3, H).T.astype(jnp.float32))
    wcat = wcat.at[:, 3:7].set(w2.reshape(4, H).T.astype(jnp.float32))
    fcw = jnp.zeros((2, NP), jnp.float32).at[:, :num_classes].set(
        fc_w.T.astype(jnp.float32))
    fcb = jnp.zeros((1, NP), jnp.float32).at[0, :num_classes].set(
        fc_b.astype(jnp.float32))
    return {
        "emb_table": params["emb"].astype(jnp.float32),
        "wcat": wcat,
        "cb": jnp.stack([b1[0], b2[0]]).reshape(1, 2).astype(jnp.float32),
        "fcw": fcw,
        "fcb": fcb,
    }


# ---------------------------------- forward -----------------------------------

@partial(jax.jit, static_argnames=("num_classes",))
def experiment2_forward(tokens, pre, *, num_classes):
    B, S = tokens.shape
    H = pre["emb_table"].shape[1]
    NP = pre["fcw"].shape[1]

    # Batch-block rows: 8 rows per grid step (or the whole batch when B < 8).
    BT = 8 if B >= 8 else B
    B_pad = pl.cdiv(B, BT) * BT
    tokens = tokens.astype(jnp.int32)
    if B_pad != B:
        tokens = jnp.zeros((B_pad, S), jnp.int32).at[:B].set(tokens)

    grid_spec = pltpu.PrefetchScalarGridSpec(
        num_scalar_prefetch=1,                                 # tokens -> SMEM
        grid=(B_pad // BT,),
        in_specs=[
            pl.BlockSpec(memory_space=pl.ANY),                 # emb table stays in HBM
            pl.BlockSpec((H, NP), lambda i, tok: (0, 0)),      # conv taps (resident)
            pl.BlockSpec((1, 2), lambda i, tok: (0, 0)),       # conv biases
            pl.BlockSpec((2, NP), lambda i, tok: (0, 0)),      # fc weight^T (padded)
            pl.BlockSpec((1, NP), lambda i, tok: (0, 0)),      # fc bias (padded)
        ],
        out_specs=pl.BlockSpec((BT, NP), lambda i, tok: (i, 0)),
        scratch_shapes=[pltpu.VMEM((BT * S, H), jnp.float32),
                        pltpu.SemaphoreType.DMA],
    )

    out_pad = pl.pallas_call(
        fused_kernel,
        out_shape=jax.ShapeDtypeStruct((B_pad, NP), jnp.float32),
        grid_spec=grid_spec,
        compiler_params=pltpu.CompilerParams(
            dimension_semantics=("parallel",)),
    )(tokens, pre["emb_table"], pre["wcat"], pre["cb"], pre["fcw"], pre["fcb"])

    return out_pad[:B, :num_classes]


# ------------------------------ pure-JAX reference ----------------------------

def reference_forward(tokens, params):
    emb = params["emb"][tokens]                               # (B, S, H)
    S = emb.shape[1]

    def conv_relu_max(w, b, k):
        T = S - k + 1
        wk = w.reshape(k, -1)
        ys = []
        for t in range(T):
            ys.append(jnp.einsum("bkh,kh->b", emb[:, t:t + k, :], wk) + b[0])
        y = jnp.maximum(jnp.stack(ys, axis=-1), 0.0)          # (B, T)
        return jnp.max(y, axis=-1, keepdims=True)             # (B, 1)

    w1, b1 = params["conv1"]
    w2, b2 = params["conv2"]
    feat = jnp.concatenate(
        [conv_relu_max(w1, b1, 3), conv_relu_max(w2, b2, 4)], axis=1)  # (B, 2)
    fc_w, fc_b = params["fc"]
    return feat @ fc_w.T + fc_b


# ----------------------------------- main -------------------------------------

if __name__ == "__main__":
    B, S = 2, 16
    vocab_size, hidden_dim, num_classes = 50, 32, 3
    PAD_IX = 0  # padding_idx only affects training grads; forward is a plain gather.

    key = jax.random.PRNGKey(0)
    keys = jax.random.split(key, 8)

    # "pre_trained_embeddings" — deterministic synthetic table (frozen in the module).
    pre_trained = jax.random.normal(keys[0], (vocab_size, hidden_dim), jnp.float32) * 0.1

    def conv_init(kk, k):
        fan_in = 1 * k * hidden_dim
        bound = 1.0 / np.sqrt(fan_in)
        w = jax.random.uniform(kk[0], (1, 1, k, hidden_dim), jnp.float32, -bound, bound)
        b = jax.random.uniform(kk[1], (1,), jnp.float32, -bound, bound)
        return w, b

    w1, b1 = conv_init(keys[1:3], 3)
    w2, b2 = conv_init(keys[3:5], 4)

    bound = 1.0 / np.sqrt(2.0)
    fc_w = jax.random.uniform(keys[5], (num_classes, 2), jnp.float32, -bound, bound)
    fc_b = jax.random.uniform(keys[6], (num_classes,), jnp.float32, -bound, bound)

    params = {
        "emb": pre_trained,
        "conv1": (w1, b1),
        "conv2": (w2, b2),
        "fc": (fc_w, fc_b),
    }
    tokens = jax.random.randint(keys[7], (B, S), 0, vocab_size, dtype=jnp.int32)

    pre = preprocess_params(params, num_classes)

    out = jax.block_until_ready(
        experiment2_forward(tokens, pre, num_classes=num_classes))
    ref = jax.block_until_ready(reference_forward(tokens, params))

    np.testing.assert_allclose(np.asarray(out), np.asarray(ref), rtol=1e-4, atol=1e-4)
    assert out.shape == (B, num_classes)
    print("KERNEL_OK")
</pallas_src>

<mosaic_0001>
module attributes {stable_mosaic.version = 11 : i64} {
  func.func @fused_kernel(%arg0: i32, %arg1: memref<2x16xi32, #tpu.memory_space<smem>>, %arg2: memref<50x32xf32, #tpu.memory_space<any>>, %arg3: memref<32x128xf32, #tpu.memory_space<vmem>>, %arg4: memref<1x2xf32, #tpu.memory_space<vmem>>, %arg5: memref<2x128xf32, #tpu.memory_space<vmem>>, %arg6: memref<1x128xf32, #tpu.memory_space<vmem>>, %arg7: memref<2x128xf32, #tpu.memory_space<vmem>>, %arg8: memref<32x32xf32, #tpu.memory_space<vmem>>, %arg9: memref<!tpu.dma_semaphore, #tpu.memory_space<semaphore_mem>>) attributes {dimension_semantics = [#tpu.dimension_semantics<parallel>], iteration_bounds = array<i64: 1>, scalar_prefetch = 1 : i64, scratch_operands = 2 : i64, tpu.core_type = #tpu.core_type<tc>, window_params = [{}, {pipeline_mode = #tpu.pipeline_mode<synchronous>, transform_indices = @transform_1, window_bounds = array<i64: 32, 128>}, {pipeline_mode = #tpu.pipeline_mode<synchronous>, transform_indices = @transform_2, window_bounds = array<i64: 1, 2>}, {pipeline_mode = #tpu.pipeline_mode<synchronous>, transform_indices = @transform_3, window_bounds = array<i64: 2, 128>}, {pipeline_mode = #tpu.pipeline_mode<synchronous>, transform_indices = @transform_4, window_bounds = array<i64: 1, 128>}, {transform_indices = @transform_5, window_bounds = array<i64: 2, 128>}]} {
    %c0_i32 = arith.constant 0 : i32
    %c2_i32 = arith.constant 2 : i32
    %0 = arith.addi %c0_i32, %c2_i32 : i32
    %c1_i32 = arith.constant 1 : i32
    scf.for %arg10 = %c0_i32 to %0 step %c1_i32  : i32 {
      %c1_i32_18 = arith.constant 1 : i32
      %41 = arith.muli %arg10, %c1_i32_18 : i32
      %c0_i32_19 = arith.constant 0 : i32
      %42 = arith.addi %c0_i32_19, %41 : i32
      %c0_i32_20 = arith.constant 0 : i32
      %c16_i32 = arith.constant 16 : i32
      %43 = arith.addi %c0_i32_20, %c16_i32 : i32
      %c1_i32_21 = arith.constant 1 : i32
      scf.for %arg11 = %c0_i32_20 to %43 step %c1_i32_21  : i32 {
        %c1_i32_23 = arith.constant 1 : i32
        %44 = arith.muli %arg11, %c1_i32_23 : i32
        %c0_i32_24 = arith.constant 0 : i32
        %45 = arith.addi %c0_i32_24, %44 : i32
        %c2_i32_25 = arith.constant 2 : i32
        %46 = arith.muli %arg0, %c2_i32_25 : i32
        %47 = arith.addi %46, %42 : i32
        %48 = arith.index_cast %47 : i32 to index
        %49 = arith.index_cast %45 : i32 to index
        %50 = memref.load %arg1[%48, %49] : memref<2x16xi32, #tpu.memory_space<smem>>
        %c16_i32_26 = arith.constant 16 : i32
        %51 = arith.muli %42, %c16_i32_26 : i32
        %52 = arith.addi %51, %45 : i32
        %c0_i32_27 = arith.constant 0 : i32
        %53 = tpu.memref_slice %arg2[%50, %c0_i32_27] : memref<50x32xf32, #tpu.memory_space<any>> -> memref<1x32xf32, #tpu.memory_space<any>>
        %54 = tpu.memref_squeeze %53 : memref<1x32xf32, #tpu.memory_space<any>> -> memref<32xf32, #tpu.memory_space<any>>
        %c0_i32_28 = arith.constant 0 : i32
        %55 = tpu.memref_slice %arg8[%52, %c0_i32_28] : memref<32x32xf32, #tpu.memory_space<vmem>> -> memref<1x32xf32, #tpu.memory_space<vmem>>
        %56 = tpu.memref_squeeze %55 : memref<1x32xf32, #tpu.memory_space<vmem>> -> memref<32xf32, #tpu.memory_space<vmem>>
        tpu.enqueue_dma source(%54 : memref<32xf32, #tpu.memory_space<any>>) target(%56 : memref<32xf32, #tpu.memory_space<vmem>>) target_semaphore(%arg9 : memref<!tpu.dma_semaphore, #tpu.memory_space<semaphore_mem>>)
      }
      %c16_i32_22 = arith.constant 16 : i32
    }
    %c2_i32_0 = arith.constant 2 : i32
    %c0_i32_1 = arith.constant 0 : i32
    %c32_i32 = arith.constant 32 : i32
    %1 = arith.addi %c0_i32_1, %c32_i32 : i32
    %c1_i32_2 = arith.constant 1 : i32
    scf.for %arg10 = %c0_i32_1 to %1 step %c1_i32_2  : i32 {
      %c0_i32_18 = arith.constant 0 : i32
      %c0_i32_19 = arith.constant 0 : i32
      %c0_i32_20 = arith.constant 0 : i32
      %41 = tpu.memref_slice %arg2[%c0_i32_18, %c0_i32_20] : memref<50x32xf32, #tpu.memory_space<any>> -> memref<1x32xf32, #tpu.memory_space<any>>
      %42 = tpu.memref_squeeze %41 : memref<1x32xf32, #tpu.memory_space<any>> -> memref<32xf32, #tpu.memory_space<any>>
      %c0_i32_21 = arith.constant 0 : i32
      %43 = tpu.memref_slice %arg8[%c0_i32_19, %c0_i32_21] : memref<32x32xf32, #tpu.memory_space<vmem>> -> memref<1x32xf32, #tpu.memory_space<vmem>>
      %44 = tpu.memref_squeeze %43 : memref<1x32xf32, #tpu.memory_space<vmem>> -> memref<32xf32, #tpu.memory_space<vmem>>
      tpu.wait_dma2 semaphore(%arg9 : memref<!tpu.dma_semaphore, #tpu.memory_space<semaphore_mem>>) src(%42 : memref<32xf32, #tpu.memory_space<any>>) dst(%44 : memref<32xf32, #tpu.memory_space<vmem>>)
    }
    %c0 = arith.constant 0 : index
    %c0_3 = arith.constant 0 : index
    %2 = vector.load %arg8[%c0, %c0_3] : memref<32x32xf32, #tpu.memory_space<vmem>>, vector<32x32xf32>
    %c0_4 = arith.constant 0 : index
    %c0_5 = arith.constant 0 : index
    %3 = vector.load %arg3[%c0_4, %c0_5] : memref<32x128xf32, #tpu.memory_space<vmem>>, vector<32x128xf32>
    %cst = arith.constant dense<0.000000e+00> : vector<32x128xf32>
    %4 = tpu.matmul %2, %3, %cst {dimension_numbers = #tpu.dot_dimension_numbers<[1], [0], [0], [1], [0, 0, 1, 1], [], []>, precision = #tpu.contract_precision<fp32>} : vector<32x32xf32>, vector<32x128xf32>, vector<32x128xf32> -> vector<32x128xf32>
    %5 = vector.shape_cast %4 : vector<32x128xf32> to vector<2x16x128xf32>
    %6 = vector.extract_strided_slice %5 {offsets = [0, 0, 0], sizes = [2, 14, 1], strides = [1, 1, 1]} : vector<2x16x128xf32> to vector<2x14x1xf32>
    %7 = vector.extract_strided_slice %5 {offsets = [0, 1, 1], sizes = [2, 14, 1], strides = [1, 1, 1]} : vector<2x16x128xf32> to vector<2x14x1xf32>
    %8 = arith.addf %6, %7 : vector<2x14x1xf32>
    %9 = vector.extract_strided_slice %5 {offsets = [0, 2, 2], sizes = [2, 14, 1], strides = [1, 1, 1]} : vector<2x16x128xf32> to vector<2x14x1xf32>
    %10 = arith.addf %8, %9 : vector<2x14x1xf32>
    %11 = vector.extract_strided_slice %5 {offsets = [0, 0, 3], sizes = [2, 13, 1], strides = [1, 1, 1]} : vector<2x16x128xf32> to vector<2x13x1xf32>
    %12 = vector.extract_strided_slice %5 {offsets = [0, 1, 4], sizes = [2, 13, 1], strides = [1, 1, 1]} : vector<2x16x128xf32> to vector<2x13x1xf32>
    %13 = arith.addf %11, %12 : vector<2x13x1xf32>
    %14 = vector.extract_strided_slice %5 {offsets = [0, 2, 5], sizes = [2, 13, 1], strides = [1, 1, 1]} : vector<2x16x128xf32> to vector<2x13x1xf32>
    %15 = arith.addf %13, %14 : vector<2x13x1xf32>
    %16 = vector.extract_strided_slice %5 {offsets = [0, 3, 6], sizes = [2, 13, 1], strides = [1, 1, 1]} : vector<2x16x128xf32> to vector<2x13x1xf32>
    %17 = arith.addf %15, %16 : vector<2x13x1xf32>
    %cst_6 = arith.constant dense<0xFF800000> : vector<2x1xf32>
    %18 = vector.multi_reduction <maximumf>, %10, %cst_6 [1] : vector<2x14x1xf32> to vector<2x1xf32>
    %cst_7 = arith.constant dense<0xFF800000> : vector<2x1xf32>
    %19 = vector.multi_reduction <maximumf>, %17, %cst_7 [1] : vector<2x13x1xf32> to vector<2x1xf32>
    %20 = tpu.concatenate %18, %19 in 1 : vector<2x1xf32>, vector<2x1xf32> -> vector<2x2xf32>
    %c0_8 = arith.constant 0 : index
    %c0_9 = arith.constant 0 : index
    %21 = vector.load %arg4[%c0_8, %c0_9] : memref<1x2xf32, #tpu.memory_space<vmem>>, vector<1x2xf32>
    %22 = vector.broadcast %21 : vector<1x2xf32> to vector<2x2xf32>
    %23 = arith.addf %20, %22 : vector<2x2xf32>
    %cst_10 = arith.constant 0.000000e+00 : f32
    %24 = vector.broadcast %cst_10 : f32 to vector<2x2xf32>
    %25 = arith.maximumf %23, %24 : vector<2x2xf32>
    %26 = vector.extract_strided_slice %25 {offsets = [0, 0], sizes = [2, 1], strides = [1, 1]} : vector<2x2xf32> to vector<2x1xf32>
    %c0_11 = arith.constant 0 : index
    %c0_12 = arith.constant 0 : index
    %27 = vector.load %arg5[%c0_11, %c0_12] : memref<2x128xf32, #tpu.memory_space<vmem>>, vector<1x128xf32>
    %28 = vector.broadcast %26 : vector<2x1xf32> to vector<2x128xf32>
    %29 = vector.broadcast %27 : vector<1x128xf32> to vector<2x128xf32>
    %30 = arith.mulf %28, %29 : vector<2x128xf32>
    %31 = vector.extract_strided_slice %25 {offsets = [0, 1], sizes = [2, 1], strides = [1, 1]} : vector<2x2xf32> to vector<2x1xf32>
    %c1 = arith.constant 1 : index
    %c0_13 = arith.constant 0 : index
    %32 = vector.load %arg5[%c1, %c0_13] : memref<2x128xf32, #tpu.memory_space<vmem>>, vector<1x128xf32>
    %33 = vector.broadcast %31 : vector<2x1xf32> to vector<2x128xf32>
    %34 = vector.broadcast %32 : vector<1x128xf32> to vector<2x128xf32>
    %35 = arith.mulf %33, %34 : vector<2x128xf32>
    %36 = arith.addf %30, %35 : vector<2x128xf32>
    %c0_14 = arith.constant 0 : index
    %c0_15 = arith.constant 0 : index
    %37 = vector.load %arg6[%c0_14, %c0_15] : memref<1x128xf32, #tpu.memory_space<vmem>>, vector<1x128xf32>
    %38 = vector.broadcast %37 : vector<1x128xf32> to vector<2x128xf32>
    %39 = arith.addf %36, %38 : vector<2x128xf32>
    %c0_16 = arith.constant 0 : index
    %c0_17 = arith.constant 0 : index
    %40 = vector.load %arg7[%c0_16, %c0_17] : memref<2x128xf32, #tpu.memory_space<vmem>>, vector<2x128xf32>
    tpu.vector_store %arg7[%c0_16, %c0_17], %39 {strides = array<i32>} : memref<2x128xf32, #tpu.memory_space<vmem>>, vector<2x128xf32>,
    return
  }
  func.func @transform_1(%arg0: i32, %arg1: memref<2x16xi32, #tpu.memory_space<smem>>) -> (i32, i32) {
    %c0_i32 = arith.constant 0 : i32
    %c0_i32_0 = arith.constant 0 : i32
    %c0_i32_1 = arith.constant 0 : i32
    return %c0_i32, %c0_i32_0 : i32, i32
  }
  func.func @transform_2(%arg0: i32, %arg1: memref<2x16xi32, #tpu.memory_space<smem>>) -> (i32, i32) {
    %c0_i32 = arith.constant 0 : i32
    %c0_i32_0 = arith.constant 0 : i32
    %c0_i32_1 = arith.constant 0 : i32
    return %c0_i32, %c0_i32_0 : i32, i32
  }
  func.func @transform_3(%arg0: i32, %arg1: memref<2x16xi32, #tpu.memory_space<smem>>) -> (i32, i32) {
    %c0_i32 = arith.constant 0 : i32
    %c0_i32_0 = arith.constant 0 : i32
    %c0_i32_1 = arith.constant 0 : i32
    return %c0_i32, %c0_i32_0 : i32, i32
  }
  func.func @transform_4(%arg0: i32, %arg1: memref<2x16xi32, #tpu.memory_space<smem>>) -> (i32, i32) {
    %c0_i32 = arith.constant 0 : i32
    %c0_i32_0 = arith.constant 0 : i32
    %c0_i32_1 = arith.constant 0 : i32
    return %c0_i32, %c0_i32_0 : i32, i32
  }
  func.func @transform_5(%arg0: i32, %arg1: memref<2x16xi32, #tpu.memory_space<smem>>) -> (i32, i32) {
    %c0_i32 = arith.constant 0 : i32
    %c0_i32_0 = arith.constant 0 : i32
    return %arg0, %c0_i32 : i32, i32
  }
}

</mosaic_0001>

<bundles_post_ra>
// kernel: experiment2_forward.1
= control target key start
LH: loop header
LB: loop body
LE: loop exit
PB: predicated region body
PF: predicated region fallthrough
CT: control target
= control target key end

     0   :  { %s1421_s0 = inlined_call_operand.vmem [shape: s32[2,16], index: 0, kind: input, shape index: {}]   ;;  %s1422_s1 = inlined_call_operand.vmem [shape: f32[50,32], index: 1, kind: input, shape index: {}]   ;;  %s1423_s2 = inlined_call_operand.vmem [shape: f32[32,128], index: 2, kind: input, shape index: {}]   ;;  %s1424_s3 = inlined_call_operand.vmem [shape: f32[1,2], index: 3, kind: input, shape index: {}]   ;;  %s1425_s4 = inlined_call_operand.vmem [shape: f32[2,128], index: 4, kind: input, shape index: {}]   ;;  %s1426_s5 = inlined_call_operand.vmem [shape: f32[1,128], index: 5, kind: input, shape index: {}]   ;;  %s1427_s6 = inlined_call_operand.hbm [shape: f32[2,128], index: 6, kind: output, shape index: {}]  }
   0x1   :  { %s11_s23 = sshll.u32 %s1421_s0, 4  ;;  %s12_s23 = int_to_ptr.vmem [resolvable:$true] %s11_s23 }
   0x2   :  { %s1193_s24 = scalar_lea.vmem %s12_s23, 32  ;;  %p1198_p1 = scmp.lt.s32.totalorder %s12_s23, %s12_s23 }
   0x3   :  { %p1194_p0 = scmp.ne.s32.totalorder %s12_s23, %s1193_s24  ;;  %p1199_p2 = scmp.lt.s32.totalorder %s1193_s24, %s1193_s24 }
   0x5   :  { %p1200_p3 = por %p1199_p2, %p1198_p1 }
   0x7   :  { %p1201_p4 = pnand %p1200_p3, %p1194_p0 }
   0x9   :  { %1204 = shalt.err (!%p1201_p4)  }
   0xa   :  { %s1257_s25 = smov [#allocation5]  }
   0xb   :  { %14 = dma.vmem_to_smem %s12_s23, 32, %s1257_s25, [#allocation4] }
   0xc   :  { %1239 = dma.done.wait [#allocation4], 32 }
   0xd   :  { %1240 = vsyncadd [#allocation4], 4294967264 }
   0xe   :  { %16 = sfence }
   0xf   :  { %17 = vsyncpa [#allocation7], 0  ;;  %s1245_s26 = smov 0  }
  0x10 LB: > { %s1249_s27 = smov 0   ;;  %s1247_s26 = sphi %s1245_s26, %s31_s26  }
  0x11 LB: >> { %s40_s0 = sshra.s32 %s1251_s27, 7  ;;  %s45_s28 = sand.u32 127, %s1251_s27  ;;  %s1251_s27 = sphi %s1249_s27, %s37_s27  }
  0x12   : >> { %s42_s29 = sadd.s32 %s1247_s26, %s40_s0  ;;  %s954_s8 = sshll.u32 %s1247_s26, 4 }
  0x13   : >> { %s953_s30 = sshll.u32 %s42_s29, 7  ;;  %s49_s10 = sadd.s32 %s1251_s27, %s954_s8 }
  0x14   : >> { %s46_s7 = sadd.s32 %s953_s30, %s45_s28  ;;  %s51_s14 = scalar_lea.vmem [#allocation2], %s49_s10 }
  0x15   : >> { %s47_s9 = sld [smem:[#allocation5 + %s46_s7]] }
  0x1b   : >> { %s50_s13 = scalar_lea.vmem %s1422_s1, %s47_s9 }
  0x1c   : >> { %v69_v0 = vld [vmem:[%s50_s13] sm:$0x1] }
  0x1d   : >> { %70 = vst [vmem:[%s51_s14] sm:$0x1] %v69_v0 }
  0x1e   : >> { %95 = vsyncadd [#allocation3], 16  ;;  %s37_s27 = sadd.s32 1, %s1251_s27  }
  0x1f   : >> { %p34_p5 = scmp.ge.s32.totalorder %s37_s27, 16  }
  0x20   : > { %s31_s26 = sadd.s32 (%p34_p5), 1, %s1247_s26  }
  0x21   : > { %36 = sbr.rel (!%p34_p5) target bundleno = 17 (0x11), region = 99  ;;  %p28_p6 = scmp.ge.s32.totalorder (%p34_p5), %s31_s26, 2  }
  0x28   :  { %30 = sbr.rel (!%p28_p6) target bundleno = 16 (0x10), region = 110  ;;  %s1253_s15 = smov (%p28_p6), 0  }
  0x2f LB: > { %1241 = dma.done.wait [#allocation3], 16  ;;  %s1255_s15 = sphi %s1253_s15, %s101_s15  }
  0x30   : > { %1242 = vsyncadd [#allocation3], 4294967280  ;;  %s101_s15 = sadd.s32 1, %s1255_s15  }
  0x31   : > { %p98_p7 = scmp.ge.s32.totalorder %s101_s15, 32  }
  0x32   :  { %v108_v1 = vld [vmem:[%s1423_s2] sm:$0xff] (%p98_p7)  ;;  %v109_v2 = vld [vmem:[%s1423_s2 + $0x8] sm:$0xff] (%p98_p7)  ;;  %v110_v3 = vld [vmem:[%s1423_s2 + $0x10] sm:$0xff] (%p98_p7)  ;;  %vm112_vm0 = vcmask (%p98_p7), 261120   ;;  %s1259_s23 = smov (%p98_p7), 127   ;;  %vm743_vm1 = vcmask (%p98_p7), 1046528  }
  0x33   :  { %100 = sbr.rel (!%p98_p7) target bundleno = 47 (0x2f), region = 121  ;;  %v126_v4 = vand.u32 (%p98_p7), 4294901760, %v108_v1  ;;  %v129_v5 = vand.u32 (%p98_p7), 4294901760, %v109_v2  ;;  %v111_v6 = vld [vmem:[%s1423_s2 + $0x18] sm:$0xff] (%p98_p7)  ;;  %v132_v7 = vand.u32 (%p98_p7), 4294901760, %v110_v3  ;;  %v104_v8 = vld [vmem:[#allocation2] sm:$0xff] (%p98_p7) }
  0x34   :  { %v105_v9 = vld [vmem:[#allocation2 + $0x8] sm:$0xff] (%p98_p7)  ;;  %v135_v10 = vand.u32 (%p98_p7), 4294901760, %v111_v6  ;;  %v114_v11 = vsel (%p98_p7), %vm112_vm0, %v104_v8, 0  ;;  %v106_v13 = vld [vmem:[#allocation2 + $0x10] sm:$0xff] (%p98_p7)  ;;  %v107_v14 = vld [vmem:[#allocation2 + $0x18] sm:$0xff] (%p98_p7)  ;;  %s1258_s2 = smov (%p98_p7), 126  }
  0x35   :  { %v117_v12 = vsel (%p98_p7), %vm112_vm0, %v105_v9, 0  ;;  %v1319_v15 = vpack.c.bf16 (%p98_p7), %v129_v5, %v126_v4  ;;  %v1321_v16 = vand.u32 (%p98_p7), 4294901760, %v114_v11  ;;  %v236_v18 = vsub.f32 (%p98_p7), %v108_v1, %v126_v4  ;;  %s1260_s24 = smov (%p98_p7), 125   ;;  %s1263_s7 = smov (%p98_p7), [#allocation6]  }
  0x36   :  { %v1323_v17 = vand.u32 (%p98_p7), 4294901760, %v117_v12  ;;  %v1325_v19 = vpack.c.bf16 (%p98_p7), %v135_v10, %v132_v7  ;;  %v243_v20 = vsub.f32 (%p98_p7), %v109_v2, %v129_v5  ;;  %v120_v21 = vsel (%p98_p7), %vm112_vm0, %v106_v13, 0  ;;  %s910_s8 = sshll.u32 (%p98_p7), %s1263_s7, 4  ;;  %s911_s8 = int_to_ptr.vmem [resolvable:$true] %s910_s8 }
  0x37   :  { %v123_v22 = vsel (%p98_p7), %vm112_vm0, %v107_v14, 0  ;;  %1093 = vmatprep.subr.bf16.mxu1 (%p98_p7), %v1319_v15  ;;  %1117 = vmatprep.subr.bf16.mxu0 (%p98_p7), %v1319_v15  ;;  %v1332_v23 = vsub.f32 (%p98_p7), %v114_v11, %v1321_v16  ;;  %v237_v25 = vand.u32 (%p98_p7), 4294901760, %v236_v18  ;;  %v1337_v26 = vand.u32 (%p98_p7), 4294901760, %v120_v21  ;;  %s1205_s9 = scalar_lea.vmem (%p98_p7), %s911_s8, 32  ;;  %p1210_p9 = scmp.lt.s32.totalorder (%p98_p7), %s911_s8, %s911_s8 }
  0x38   :  { %v1335_v24 = vsub.f32 (%p98_p7), %v117_v12, %v1323_v17  ;;  %1095 = vmatpush3.bf16.msra.mxu1 (%p98_p7), %v1319_v15  ;;  %1119 = vmatpush3.bf16.msra.mxu0 (%p98_p7), %v1319_v15  ;;  %v244_v27 = vand.u32 (%p98_p7), 4294901760, %v243_v20  ;;  %v1341_v28 = vand.u32 (%p98_p7), 4294901760, %v123_v22  ;;  %v250_v29 = vsub.f32 (%p98_p7), %v110_v3, %v132_v7  ;;  %p1206_p8 = scmp.ne.s32.totalorder (%p98_p7), %s911_s8, %s1205_s9  ;;  %p1211_p10 = scmp.lt.s32.totalorder (%p98_p7), %s1205_s9, %s1205_s9 }
  0x39   :  { %v257_v30 = vsub.f32 (%p98_p7), %v111_v6, %v135_v10  ;;  %1097 = vmatprep.subr.bf16.mxu1 (%p98_p7), %v1325_v19  ;;  %1121 = vmatprep.subr.bf16.mxu0 (%p98_p7), %v1325_v19  ;;  %v196_v31 = vand.u32 (%p98_p7), 4294901760, %v1332_v23  ;;  %v238_v33 = vsub.f32 (%p98_p7), %v236_v18, %v237_v25  ;;  %v1348_v34 = vsub.f32 (%p98_p7), %v120_v21, %v1337_v26 }
  0x3a   :  { %v206_v32 = vand.u32 4294901760, %v1335_v24  ;;  %v245_v35 = vsub.f32 %v243_v20, %v244_v27  ;;  %v1124_v36 = vpack.c.bf16 %v244_v27, %v237_v25  ;;  %v1351_v37 = vsub.f32 %v123_v22, %v1341_v28  ;;  %p1212_p11 = por %p1211_p10, %p1210_p9 }
  0x3b   :  { %v251_v38 = vand.u32 4294901760, %v250_v29  ;;  %v197_v39 = vsub.f32 %v1332_v23, %v196_v31  ;;  %1058 = vmatprep.mubr.f32.mxu0 %v196_v31  ;;  %v239_v41 = vand.u32 4294901760, %v238_v33  ;;  %v216_v42 = vand.u32 4294901760, %v1348_v34 }
  0x3c   :  { %v207_v40 = vsub.f32 %v1335_v24, %v206_v32  ;;  %1099 = vmatpush3.bf16.msra.mxu1 %v1325_v19  ;;  %1123 = vmatpush3.bf16.msra.mxu0 %v1325_v19  ;;  %v246_v43 = vand.u32 4294901760, %v245_v35  ;;  %v226_v44 = vand.u32 4294901760, %v1351_v37  ;;  %v258_v46 = vand.u32 4294901760, %v257_v30  ;;  %p1213_p12 = pnand %p1212_p11, %p1206_p8 }
  0x3d   :  { %v252_v45 = vsub.f32 %v250_v29, %v251_v38  ;;  %v198_v47 = vand.u32 4294901760, %v197_v39  ;;  %1125 = vmatprep.subr.bf16.mxu0 %v1124_v36  ;;  %v217_v49 = vsub.f32 %v1348_v34, %v216_v42  ;;  %v1108_v59 = vpack.c.bf16 %v243_v20, %v236_v18 }
  0x3e   :  { %v208_v48 = vand.u32 4294901760, %v207_v40  ;;  %v1100_v50 = vpack.c.bf16 %v246_v43, %v239_v41  ;;  %v227_v51 = vsub.f32 %v1351_v37, %v226_v44  ;;  %v259_v53 = vsub.f32 %v257_v30, %v258_v46 }
  0x3f   :  { %v253_v52 = vand.u32 4294901760, %v252_v45  ;;  %1016 = vmatprep.mubr.f32.mxu1 %v198_v47  ;;  %1059 = vmatmul.mubr.f32.vlgmr.msra.gmra.mrb[0].mxu0 %v206_v32  ;;  %v218_v54 = vand.u32 4294901760, %v217_v49  ;;  %v1128_v55 = vpack.c.bf16 %v258_v46, %v251_v38  ;;  %v1112_v60 = vpack.c.bf16 %v257_v30, %v250_v29 }
  0x40   :  { %1017 = vmatmul.mubr.f32.vlgmr.msra.gmra.mrb[0].mxu1 %v208_v48  ;;  %1101 = vmatprep.subr.bf16.mxu1 %v1100_v50  ;;  %v228_v56 = vand.u32 4294901760, %v227_v51  ;;  %v260_v57 = vand.u32 4294901760, %v259_v53  ;;  %vm766_vm2 = vcmask 1045504   ;;  %vm789_vm3 = vcmask 1044480  }
  0x41   :  { %1103 = vmatpush3.bf16.msra.mxu1 %v1100_v50  ;;  %1127 = vmatpush3.bf16.msra.mxu0 %v1124_v36  ;;  %vm812_vm4 = vcmask 7168   ;;  %vm814_vm5 = vcmask 5120   ;;  %vm834_vm6 = vcmask 28696   ;;  %vm832_vm7 = vcmask 31768  }
  0x42   :  { %1019 = vmatprep.mubr.f32.mxu1 %v218_v54  ;;  %1061 = vmatprep.mubr.f32.mxu0 %v216_v42  ;;  %v1104_v58 = vpack.c.bf16 %v260_v57, %v253_v52  ;;  %vm854_vm8 = vcmask 1041409  }
  0x43   :  { %1062 = vmatmul.mubr.f32.gmra.mrb[2].mxu0 %v226_v44  ;;  %1129 = vmatprep.subr.bf16.mxu0 %v1128_v55 }
  0x44   :  { %1020 = vmatmul.mubr.f32.gmra.mrb[2].mxu1 %v228_v56  ;;  %1105 = vmatprep.subr.bf16.mxu1 %v1104_v58 }
  0x45   :  { %1107 = vmatpush3.bf16.msra.mxu1 %v1104_v58  ;;  %1131 = vmatpush3.bf16.msra.mxu0 %v1128_v55 }
  0x46   :  { %1030 = vmatprep.mubr.f32.mxu1 %v1321_v16  ;;  %1072 = vmatprep.mubr.f32.mxu0 %v1321_v16 }
  0x47   :  { %1109 = vmatprep.subr.bf16.mxu1 %v1108_v59  ;;  %1133 = vmatprep.subr.bf16.mxu0 %v1319_v15 }
  0x48   :  { %1031 = vmatmul.mubr.f32.vlgmr.msra.gmra.mrb[0].mxu1 %v1323_v17  ;;  %1073 = vmatmul.mubr.f32.vlgmr.msra.gmra.mrb[0].mxu0 %v1323_v17 }
  0x49   :  { %1111 = vmatpush3.bf16.msra.mxu1 %v1108_v59  ;;  %1135 = vmatpush3.bf16.msra.mxu0 %v1319_v15 }
  0x4a   :  { %1033 = vmatprep.mubr.f32.mxu1 %v1337_v26  ;;  %1075 = vmatprep.mubr.f32.mxu0 %v1337_v26 }
  0x4b   :  { %1113 = vmatprep.subr.bf16.mxu1 %v1112_v60  ;;  %1137 = vmatprep.subr.bf16.mxu0 %v1325_v19 }
  0x4c   :  { %1034 = vmatmul.mubr.f32.gmra.mrb[2].mxu1 %v1341_v28  ;;  %1076 = vmatmul.mubr.f32.gmra.mrb[2].mxu0 %v1341_v28 }
  0x4d   :  { %1115 = vmatpush3.bf16.msra.mxu1 %v1112_v60  ;;  %1139 = vmatpush3.bf16.msra.mxu0 %v1325_v19 }
  0x4e   :  { %1044 = vmatprep.mubr.f32.mxu1 %v1332_v23  ;;  %1086 = vmatprep.mubr.f32.mxu0 %v1321_v16 }
  0x50   :  { %1045 = vmatmul.mubr.f32.vlgmr.msra.gmra.mrb[0].mxu1 %v1335_v24  ;;  %1087 = vmatmul.mubr.f32.vlgmr.msra.gmra.mrb[0].mxu0 %v1323_v17 }
  0x51   :  { %1047 = vmatprep.mubr.f32.mxu1 %v1348_v34  ;;  %1089 = vmatprep.mubr.f32.mxu0 %v1337_v26 }
  0x54   :  { %1048 = vmatmul.mubr.f32.gmra.mrb[2].mxu1 %v1351_v37  ;;  %1090 = vmatmul.mubr.f32.gmra.mrb[2].mxu0 %v1341_v28 }
 0x123   :  { %v1046_v61 = vpop.f32.mrb[0].mxu1  ;;  %v1088_v62 = vpop.f32.mrb[0].mxu0 }
 0x124   :  { %v1140_v63 = vadd.f32 %v1088_v62, %v1046_v61  ;;  %v419_v0 = vpop.f32.mrb[1].mxu1  ;;  %v717_v1 = vpop.f32.mrb[1].mxu0 }
 0x125   :  { %v1141_v2 = vadd.f32 %v717_v1, %v419_v0 }
 0x126   :  { %v768_v3 = vrot.slane %v1140_v63, 2  ;;  %v745_v4 = vrot.slane %v1140_v63, 1  ;;  %v791_v12 = vrot.slane %v1140_v63, 3 }
 0x127   :  { %v1049_v5 = vpop.f32.mrb[2].mxu1  ;;  %v1091_v6 = vpop.f32.mrb[2].mxu0  ;;  %v744_v7 = vrot.slane %v1141_v2, 1  ;;  %v767_v14 = vrot.slane %v1141_v2, 2  ;;  %v790_v17 = vrot.slane %v1141_v2, 3 }
 0x128   :  { %v1142_v8 = vadd.f32 %v1091_v6, %v1049_v5  ;;  %v729_v9 = vpop.f32.mrb[3].mxu0  ;;  %775 = vrot.lane.b32.xlu1 %v768_v3, %s1258_s2  ;;  %752 = vrot.lane.b32.xlu0 %v745_v4, %s1259_s23  ;;  %v433_v10 = vpop.f32.mrb[3].mxu1 }
 0x129   :  { %v1143_v11 = vadd.f32 %v729_v9, %v433_v10  ;;  %v746_v13 = vsel %vm743_vm1, %v744_v7, %v745_v4  ;;  %v769_v16 = vsel %vm766_vm2, %v767_v14, %v768_v3  ;;  %v792_v19 = vsel %vm789_vm3, %v790_v17, %v791_v12 }
 0x12a   :  { %v748_v15 = vrot.slane %v1142_v8, 1  ;;  %v771_v18 = vrot.slane %v1142_v8, 2  ;;  %v794_v25 = vrot.slane %v1142_v8, 3 }
 0x12b   :  { %v770_v20 = vrot.slane %v1143_v11, 2  ;;  %v747_v21 = vrot.slane %v1143_v11, 1  ;;  %v793_v24 = vrot.slane %v1143_v11, 3 }
 0x12c   :  { %798 = vrot.lane.b32.xlu1 %v791_v12, %s1260_s24  ;;  %750 = vrot.lane.b32.xlu0 %v746_v13, %s1259_s23 }
 0x12d   :  { %v772_v22 = vsel %vm766_vm2, %v770_v20, %v771_v18  ;;  %v749_v23 = vsel %vm743_vm1, %v747_v21, %v748_v15  ;;  %v795_v26 = vsel %vm789_vm3, %v793_v24, %v794_v25 }
 0x130   :  { %773 = vrot.lane.b32.xlu0 %v769_v16, %s1258_s2  ;;  %756 = vrot.lane.b32.xlu1 %v748_v15, %s1259_s23  ;;  %v1261_v15 = vmov 1   ;;  %v1262_v16 = vmov 0  }
 0x131   :  { %1192 = vset.pattern.permute.xlu0 %v1261_v15  ;;  %1191 = vset.pattern.permute.xlu1 %v1262_v16 }
 0x134   :  { %796 = vrot.lane.b32.xlu0 %v792_v19, %s1260_s24  ;;  %779 = vrot.lane.b32.xlu1 %v771_v18, %s1258_s2 }
 0x138   :  { %777 = vrot.lane.b32.xlu0 %v772_v22, %s1258_s2  ;;  %754 = vrot.lane.b32.xlu1 %v749_v23, %s1259_s23 }
 0x13c   :  { %800 = vrot.lane.b32.xlu0 %v795_v26, %s1260_s24  ;;  %802 = vrot.lane.b32.xlu1 %v794_v25, %s1260_s24 }
 0x19a   :  { %v776_v27 = vpop.permute.xlu1 %775  ;;  %v753_v28 = vpop.permute.xlu0 %752 }
 0x19b   :  { %v763_v29 = vadd.f32 %v1140_v63, %v753_v28 }
 0x19d   :  { %v786_v32 = vadd.f32 %v776_v27, %v763_v29  ;;  %v955_v27 = vld [vmem:[%s1424_s3] ss:$0 sm:$0xff] }
 0x19e   :  { %v799_v30 = vpop.permute.xlu1 %798  ;;  %v751_v31 = vpop.permute.xlu0 %750 }
 0x19f   :  { %v762_v33 = vadd.f32 %v1141_v2, %v751_v31  ;;  %v809_v37 = vadd.f32 %v799_v30, %v786_v32  ;;  %v815_v38 = vsel %vm814_vm5, %v786_v32, -inf  ;;  %v957_v32 = vld [vmem:[%s1425_s4 + $0x1] ss:$0 sm:$0xff] }
 0x1a1   :  { %v835_v45 = vsel %vm834_vm6, %v809_v37, -inf }
 0x1a2   :  { %v774_v34 = vpop.permute.xlu0 %773  ;;  %v757_v35 = vpop.permute.xlu1 %756 }
 0x1a3   :  { %v785_v36 = vadd.f32 %v774_v34, %v762_v33  ;;  %v765_v46 = vadd.f32 %v1142_v8, %v757_v35  ;;  %v956_v33 = vld [vmem:[%s1425_s4] ss:$0 sm:$0xff] }
 0x1a5   :  { %v813_v39 = vsel %vm812_vm4, %v785_v36, -inf }
 0x1a6   :  { %v816_v40 = vmax.f32 %v813_v39, %v815_v38  ;;  %v797_v41 = vpop.permute.xlu0 %796  ;;  %v780_v42 = vpop.permute.xlu1 %779  ;;  %v958_v38 = vld [vmem:[%s1426_s5] ss:$0 sm:$0xff] }
 0x1a7   :  { %v808_v43 = vadd.f32 %v797_v41, %v785_v36  ;;  %v788_v51 = vadd.f32 %v780_v42, %v765_v46 }
 0x1a8   :  { %v817_v44 = vrot.slane %v816_v40, 4 }
 0x1a9   :  { %v833_v47 = vsel %vm832_vm7, %v808_v43, -inf  ;;  %v824_v59 = vsel %vm814_vm5, %v788_v51, -inf }
 0x1aa   :  { %v836_v48 = vmax.f32 %v833_v47, %v835_v45  ;;  %v778_v49 = vpop.permute.xlu0 %777  ;;  %v755_v50 = vpop.permute.xlu1 %754  ;;  %v818_v53 = vmax.f32 %v816_v40, %v817_v44 }
 0x1ab   :  { %v764_v52 = vadd.f32 %v1143_v11, %v755_v50 }
 0x1ac   :  { %v837_v54 = vrot.slane %v836_v48, 4  ;;  %v819_v63 = vrot.slane %v818_v53, 2 }
 0x1ad   :  { %v787_v55 = vadd.f32 %v778_v49, %v764_v52 }
 0x1ae   :  { %v838_v56 = vmax.f32 %v836_v48, %v837_v54  ;;  %v801_v57 = vpop.permute.xlu0 %800  ;;  %v803_v58 = vpop.permute.xlu1 %802  ;;  %v820_v6 = vmax.f32 %v818_v53, %v819_v63 }
 0x1af   :  { %v810_v60 = vadd.f32 %v801_v57, %v787_v55  ;;  %v823_v61 = vsel %vm812_vm4, %v787_v55, -inf  ;;  %v811_v62 = vadd.f32 %v803_v58, %v788_v51 }
 0x1b0   :  { %v825_v0 = vmax.f32 %v823_v61, %v824_v59  ;;  %v839_v3 = vrot.slane %v838_v56, 2  ;;  %v821_v12 = vrot.slane %v820_v6, 1 }
 0x1b1   :  { %v843_v1 = vsel %vm832_vm7, %v810_v60, -inf  ;;  %v844_v2 = vsel %vm834_vm6, %v811_v62, -inf }
 0x1b2   :  { %v826_v4 = vrot.slane %v825_v0, 4  ;;  %v845_v5 = vmax.f32 %v843_v1, %v844_v2  ;;  %v840_v9 = vmax.f32 %v838_v56, %v839_v3  ;;  %v822_v21 = vmax.f32 %v820_v6, %v821_v12 }
 0x1b4   :  { %v827_v7 = vmax.f32 %v825_v0, %v826_v4  ;;  %v846_v8 = vrot.slane %v845_v5, 4  ;;  %v841_v18 = vrot.slane %v840_v9, 1 }
 0x1b6   :  { %v828_v10 = vrot.slane %v827_v7, 2  ;;  %v847_v11 = vmax.f32 %v845_v5, %v846_v8  ;;  %v842_v23 = vmax.f32 %v840_v9, %v841_v18 }
 0x1b8   :  { %v829_v13 = vmax.f32 %v827_v7, %v828_v10  ;;  %v848_v14 = vrot.slane %v847_v11, 2 }
 0x1ba   :  { %v849_v17 = vmax.f32 %v847_v11, %v848_v14  ;;  %v830_v19 = vrot.slane %v829_v13, 1 }
 0x1bc   :  { %v850_v20 = vrot.slane %v849_v17, 1  ;;  %v831_v22 = vmax.f32 %v829_v13, %v830_v19 }
 0x1be   :  { %v851_v24 = vmax.f32 %v849_v17, %v850_v20  ;;  %v855_v25 = vsel %vm854_vm8, %v831_v22, %v822_v21 }
 0x1c0   :  { %v859_v26 = vsel %vm854_vm8, %v851_v24, %v842_v23 }
 0x1c1   :  { %860 = vrot.lane.b32.xlu0 %v859_v26, %s1258_s2 }
 0x233   :  { %v861_v28 = vpop.permute.xlu0 %860 }
 0x234   :  { %v863_v29 = vsel %vm812_vm4, %v855_v25, %v861_v28 }
 0x235   :  { %v871_v30 = vadd.f32 %v955_v27, %v863_v29 }
 0x237   :  { %v872_v31 = vmax.f32 %v871_v30, 0.0 }
 0x239   :  { %886 = vperm.xlu0 %1192, %v872_v31   ;;  %876 = vperm.xlu1 %1191, %v872_v31  }
 0x2b8   :  { %v887_v34 = vpop.permute.xlu0 %886  ;;  %v877_v35 = vpop.permute.xlu1 %876 }
 0x2b9   :  { %v893_v36 = vmul.f32 %v957_v32, %v887_v34  ;;  %v883_v37 = vmul.f32 %v956_v33, %v877_v35 }
 0x2bb   :  { %v894_v39 = vadd.f32 %v893_v36, %v883_v37 }
 0x2bd   :  { %v902_v40 = vadd.f32 %v958_v38, %v894_v39 }
 0x2bf   :  { %903 = vst [vmem:[#allocation6] sm:$0x3] %v902_v40 }
 0x2c0   :  { %1216 = shalt.err (!%p1213_p12)
}
 0x2c1   :  { %s1217_s11 = scalar_lea.hbm %s1427_s6, 32 }
 0x2c2   :  { %p1218_p13 = scmp.ne.s32.totalorder %s1427_s6, %s1217_s11  ;;  %p1221_p0 = scmp.lt.u32.totalorder %s1217_s11, %s1427_s6 }
 0x2c4   :  { %p1223_p1 = pnand %p1221_p0, %p1218_p13 }
 0x2c6   :  { %1226 = shalt.err (!%p1223_p1)
}
 0x2c7   :  { %913 = dma.vmem_to_hbm [thread:$0]  %s911_s8, 32, %s1427_s6, [#allocation7]  }
 0x2c8   :  { %1243 = dma.done.wait [#allocation7], 32  }
 0x2c9   :  { %1244 = vsyncadd [#allocation7], 4294967264 }
 0x2ca   :  { %917 = vsyncpa [#allocation7], 1 }
 0x2cb   :  { %918 = vsyncmov [#allocation3] }
 0x2ce   :  { %s919_s17 = vpop.sfrf %918 }
 0x2cf   :  { %p959_p2 = scmp.ne.s32.totalorder %s919_s17, 0 }
 0x2d1   :  { %923 = shalt.err (%p959_p2)  }

</bundles_post_ra>
